<compile_context>
chip_gen: v5e
topology: v5e:2x2
jax: 0.10.0
libtpu: 0.0.40
codegen_flags: <defaults>
</compile_context>

<pallas_src>
import functools

import jax
import jax.numpy as jnp
from jax.experimental import pallas as pl
from jax.experimental.pallas import tpu as pltpu


_SUBLANE = 8  # f32 sublane count


def _round_up(x, m):
    return ((x + m - 1) // m) * m


def policy_net_linear_kernel(x_ref, w_ref, b_ref, o_ref):
    # x: (tb, K) f32, w: (K, N) f32, b: (1, N) f32, o: (tb, N) f32
    x = x_ref[...]

    # Linear: standard (M,K)x(K,N) MXU matmul with f32 accumulate.
    # (Weight was transposed once in prepare_params -> no in-kernel transpose.)
    logits = jnp.dot(x, w_ref[...], preferred_element_type=jnp.float32) + b_ref[...]

    # Numerically stable softmax over the last axis.  NOTE: strictly row-wise
    # on purpose - the final batch block may be ragged and contain garbage
    # rows whose writeback Pallas masks; do not add cross-row reductions here
    # without re-adding explicit batch masking.
    m = jnp.max(logits, axis=-1, keepdims=True)
    e = jnp.exp(logits - m)
    denom = jnp.sum(e, axis=-1, keepdims=True)

    # EUP approximate reciprocal + one Newton step (~f32 accuracy, no VALU divide).
    inv = pl.reciprocal(denom, approx=True)
    inv = inv * (2.0 - denom * inv)

    o_ref[...] = (e * inv).astype(o_ref.dtype)


def prepare_params(weight, bias):
    """One-time conversion of PyTorch nn.Linear params to kernel layout.

    weight: (num_outputs, num_inputs)  -> returns (num_inputs, num_outputs)
    bias:   (num_outputs,)             -> returns (1, num_outputs)

    Call once when the policy is built, NOT inside the per-step forward.
    """
    w_t = jnp.asarray(weight, jnp.float32).T          # (K, N): MXU operand layout
    b_row = jnp.asarray(bias, jnp.float32).reshape(1, -1)
    return w_t, b_row


@functools.partial(jax.jit, static_argnames=("block_b",))
def policy_net_linear(x, w_t, b_row, *, block_b=512):
    """softmax(x @ w_t + b_row, axis=-1) as one fused Pallas TPU kernel.

    x:     (B, num_inputs)             f32
    w_t:   (num_inputs, num_outputs)   f32  (from prepare_params)
    b_row: (1, num_outputs)            f32  (from prepare_params)
    """
    B, K = x.shape
    K2, N = w_t.shape
    assert K2 == K and b_row.shape == (1, N)

    # ---- Batch tiling --------------------------------------------------------
    # Single full-extent block when B fits in one tile (no sublane constraint,
    # no ragged handling); otherwise a fixed tile of block_b rows (multiple of
    # 8 sublanes and of 256 so large-K matmuls fill the v6e/v7x MXU), with the
    # final ragged block handled by Pallas (OOB output rows are not written).
    if B <= block_b:
        tb = B
    else:
        tb = _round_up(block_b, _SUBLANE)
    grid = (pl.cdiv(B, tb),)

    # ---- VMEM budget (x/out double-buffered, weight/bias single-buffered) ---
    vmem_needed = 4 * (2 * tb * K + 2 * tb * N + K * N + N)
    vmem_limit = int(min(max(vmem_needed + (16 << 20), 32 << 20), 64 << 20))

    cost = pl.CostEstimate(
        flops=2 * B * K * N,
        transcendentals=B * N,                       # exp
        bytes_accessed=4 * (B * K + K * N + N + B * N),
    )

    out = pl.pallas_call(
        policy_net_linear_kernel,
        out_shape=jax.ShapeDtypeStruct((B, N), jnp.float32),
        grid_spec=pltpu.PrefetchScalarGridSpec(
            num_scalar_prefetch=0,
            grid=grid,
            in_specs=[
                # Activations: streamed per batch tile (default double-buffer).
                pl.BlockSpec((tb, K), lambda i: (i, 0),
                             memory_space=pltpu.MemorySpace.VMEM),
                # Weight: resident across the batch grid; block index never
                # changes -> single buffer (halves its VMEM footprint).
                pl.BlockSpec((K, N), lambda i: (0, 0),
                             memory_space=pltpu.MemorySpace.VMEM,
                             pipeline_mode=pl.Buffered(1)),
                # Bias: resident, single buffer.
                pl.BlockSpec((1, N), lambda i: (0, 0),
                             memory_space=pltpu.MemorySpace.VMEM,
                             pipeline_mode=pl.Buffered(1)),
            ],
            # Full-extent last dim: kernel writes exactly B*N*4 bytes, no
            # column padding and no post-kernel slice/copy in HBM.
            out_specs=pl.BlockSpec((tb, N), lambda i: (i, 0),
                                   memory_space=pltpu.MemorySpace.VMEM),
        ),
        compiler_params=pltpu.CompilerParams(
            # Batch axis is embarrassingly parallel -> shardable across both
            # TensorCores on v7x (near no-op on v5e/v6e).  If a v7x profile
            # shows single-TC execution, switch to pltpu.CORE_PARALLEL.
            dimension_semantics=("parallel",),
            vmem_limit_bytes=vmem_limit,
        ),
        cost_estimate=cost,
    )(x, w_t, b_row)

    return out


if __name__ == "__main__":
    # Small shapes consistent with the module's forward: (batch, num_inputs).
    batch = 8
    num_inputs = 32
    num_outputs = 16

    key = jax.random.PRNGKey(0)
    kx, kw, kb, kx2 = jax.random.split(key, 4)

    # Deterministic init (mimics nn.Linear uniform(-1/sqrt(in), 1/sqrt(in))).
    bound = 1.0 / jnp.sqrt(jnp.float32(num_inputs))
    weight = jax.random.uniform(kw, (num_outputs, num_inputs), jnp.float32,
                                minval=-bound, maxval=bound)
    bias = jax.random.uniform(kb, (num_outputs,), jnp.float32,
                              minval=-bound, maxval=bound)
    x = jax.random.normal(kx, (batch, num_inputs), jnp.float32)

    # One-time layout prep (outside the jitted per-step forward).
    w_t, b_row = prepare_params(weight, bias)
    w_t, b_row = jax.block_until_ready((w_t, b_row))

    out = jax.block_until_ready(policy_net_linear(x, w_t, b_row))

    # Reference check against plain JAX.
    ref = jax.nn.softmax(x @ weight.T + bias, axis=-1)
    assert out.shape == (batch, num_outputs)
    assert jnp.allclose(out, ref, atol=1e-3, rtol=1e-3)
    assert jnp.allclose(jnp.sum(out, axis=-1), 1.0, atol=1e-3)

    # Also exercise the multi-tile + ragged-final-block path (B % tb != 0).
    x2 = jax.random.normal(kx2, (11, num_inputs), jnp.float32)
    out2 = jax.block_until_ready(policy_net_linear(x2, w_t, b_row, block_b=8))
    ref2 = jax.nn.softmax(x2 @ weight.T + bias, axis=-1)
    assert out2.shape == (11, num_outputs)
    assert jnp.allclose(out2, ref2, atol=1e-3, rtol=1e-3)
    assert jnp.allclose(jnp.sum(out2, axis=-1), 1.0, atol=1e-3)

    print("KERNEL_OK")
</pallas_src>

<mosaic_0001>
module attributes {stable_mosaic.version = 11 : i64} {
  func.func @policy_net_linear_kernel(%arg0: i32, %arg1: memref<8x32xf32, #tpu.memory_space<vmem>>, %arg2: memref<32x16xf32, #tpu.memory_space<vmem>>, %arg3: memref<1x16xf32, #tpu.memory_space<vmem>>, %arg4: memref<8x16xf32, #tpu.memory_space<vmem>>) attributes {dimension_semantics = [#tpu.dimension_semantics<parallel>], iteration_bounds = array<i64: 1>, scalar_prefetch = 0 : i64, scratch_operands = 0 : i64, tpu.core_type = #tpu.core_type<tc>, window_params = [{transform_indices = @transform_0, window_bounds = array<i64: 8, 32>}, {pipeline_mode = #tpu.pipeline_mode<synchronous>, transform_indices = @transform_1, window_bounds = array<i64: 32, 16>}, {pipeline_mode = #tpu.pipeline_mode<synchronous>, transform_indices = @transform_2, window_bounds = array<i64: 1, 16>}, {transform_indices = @transform_3, window_bounds = array<i64: 8, 16>}]} {
    %c0 = arith.constant 0 : index
    %c0_0 = arith.constant 0 : index
    %0 = vector.load %arg1[%c0, %c0_0] : memref<8x32xf32, #tpu.memory_space<vmem>>, vector<8x32xf32>
    %c0_1 = arith.constant 0 : index
    %c0_2 = arith.constant 0 : index
    %1 = vector.load %arg2[%c0_1, %c0_2] : memref<32x16xf32, #tpu.memory_space<vmem>>, vector<32x16xf32>
    %cst = arith.constant dense<0.000000e+00> : vector<8x16xf32>
    %2 = tpu.matmul %0, %1, %cst {dimension_numbers = #tpu.dot_dimension_numbers<[1], [0], [0], [1], [0, 0, 1, 1], [], []>} : vector<8x32xf32>, vector<32x16xf32>, vector<8x16xf32> -> vector<8x16xf32>
    %c0_3 = arith.constant 0 : index
    %c0_4 = arith.constant 0 : index
    %3 = vector.load %arg3[%c0_3, %c0_4] : memref<1x16xf32, #tpu.memory_space<vmem>>, vector<1x16xf32>
    %4 = vector.broadcast %3 : vector<1x16xf32> to vector<8x16xf32>
    %5 = arith.addf %2, %4 : vector<8x16xf32>
    %cst_5 = arith.constant dense<0xFF800000> : vector<8xf32>
    %6 = vector.multi_reduction <maximumf>, %5, %cst_5 [1] : vector<8x16xf32> to vector<8xf32>
    %7 = vector.shape_cast %6 : vector<8xf32> to vector<8x1xf32>
    %8 = vector.broadcast %7 : vector<8x1xf32> to vector<8x16xf32>
    %9 = arith.subf %5, %8 : vector<8x16xf32>
    %10 = math.exp %9 : vector<8x16xf32>
    %cst_6 = arith.constant dense<0.000000e+00> : vector<8xf32>
    %11 = vector.multi_reduction <add>, %10, %cst_6 [1] : vector<8x16xf32> to vector<8xf32>
    %12 = vector.shape_cast %11 : vector<8xf32> to vector<8x1xf32>
    %13 = tpu.reciprocal %12 {approx = true} : vector<8x1xf32> -> vector<8x1xf32>
    %14 = arith.mulf %12, %13 : vector<8x1xf32>
    %cst_7 = arith.constant 2.000000e+00 : f32
    %15 = vector.broadcast %cst_7 : f32 to vector<8x1xf32>
    %16 = arith.subf %15, %14 : vector<8x1xf32>
    %17 = arith.mulf %13, %16 : vector<8x1xf32>
    %18 = vector.broadcast %17 : vector<8x1xf32> to vector<8x16xf32>
    %19 = arith.mulf %10, %18 : vector<8x16xf32>
    %c0_8 = arith.constant 0 : index
    %c0_9 = arith.constant 0 : index
    %20 = vector.load %arg4[%c0_8, %c0_9] : memref<8x16xf32, #tpu.memory_space<vmem>>, vector<8x16xf32>
    tpu.vector_store %arg4[%c0_8, %c0_9], %19 {strides = array<i32>} : memref<8x16xf32, #tpu.memory_space<vmem>>, vector<8x16xf32>,
    return
  }
  func.func @transform_0(%arg0: i32) -> (i32, i32) {
    %c0_i32 = arith.constant 0 : i32
    %c0_i32_0 = arith.constant 0 : i32
    return %arg0, %c0_i32 : i32, i32
  }
  func.func @transform_1(%arg0: i32) -> (i32, i32) {
    %c0_i32 = arith.constant 0 : i32
    %c0_i32_0 = arith.constant 0 : i32
    %c0_i32_1 = arith.constant 0 : i32
    return %c0_i32, %c0_i32_0 : i32, i32
  }
  func.func @transform_2(%arg0: i32) -> (i32, i32) {
    %c0_i32 = arith.constant 0 : i32
    %c0_i32_0 = arith.constant 0 : i32
    %c0_i32_1 = arith.constant 0 : i32
    return %c0_i32, %c0_i32_0 : i32, i32
  }
  func.func @transform_3(%arg0: i32) -> (i32, i32) {
    %c0_i32 = arith.constant 0 : i32
    %c0_i32_0 = arith.constant 0 : i32
    return %arg0, %c0_i32 : i32, i32
  }
}

</mosaic_0001>

<bundles_post_ra>
// kernel: policy_net_linear.1
= control target key start
LH: loop header
LB: loop body
LE: loop exit
PB: predicated region body
PF: predicated region fallthrough
CT: control target
= control target key end

     0   :  { %s158_s0 = inlined_call_operand.vmem [shape: f32[8,32], index: 0, kind: input, shape index: {}]   ;;  %s159_s1 = inlined_call_operand.vmem [shape: f32[32,16], index: 1, kind: input, shape index: {}]   ;;  %s160_s2 = inlined_call_operand.vmem [shape: f32[1,16], index: 2, kind: input, shape index: {}]   ;;  %s161_s3 = inlined_call_operand.hbm [shape: f32[8,16], index: 3, kind: output, shape index: {}]  }
   0x1   :  { %v19_v0 = vld [vmem:[%s159_s1 + $0x18] sm:$0xff]  ;;  %v18_v1 = vld [vmem:[%s159_s1 + $0x10] sm:$0xff]  ;;  %v17_v2 = vld [vmem:[%s159_s1 + $0x8] sm:$0xff] }
   0x2   :  { %40 = vmatpush.msra.mxu0 %v19_v0 }
   0x3   :  { %8 = vsyncpa [#allocation3], 0  ;;  %v16_v3 = vld [vmem:[%s159_s1] sm:$0xff]  ;;  %vm24_vm0 = vcmask 261120   ;;  %vm48_vm1 = vcmask 130048   ;;  %s71_s25 = sshll.u32 %s161_s3, 4  ;;  %s72_s25 = int_to_ptr.hbm [resolvable:$true] %s71_s25 }
   0x4   :  { %41 = vmatpush.msra.mxu0 %v18_v1  ;;  %v15_v4 = vld [vmem:[%s158_s0] sm:$0xff]  ;;  %s113_s0 = smov [#allocation2]  }
   0x5   :  { %v82_v5 = vld [vmem:[%s160_s2] ss:$0 sm:$0xff]  ;;  %s69_s1 = sshll.u32 %s113_s0, 4  ;;  %s70_s1 = int_to_ptr.vmem [resolvable:$true] %s69_s1 }
   0x6   :  { %42 = vmatpush.msra.mxu0 %v17_v2 }
   0x8   :  { %43 = vmatpush.msra.mxu0 %v16_v3 }
   0x9   :  { %80 = vmatmul.msk.f32.vlgmr.msra.gmra.mxu0 %vm24_vm0, %v15_v4 }
  0x86   :  { %v45_v6 = vpop.f32.mrf.mxu0 }
  0x87   :  { %v46_v7 = vadd.f32 %v82_v5, %v45_v6 }
  0x89   :  { %v49_v8 = vsel %vm48_vm1, %v46_v7, -inf }
  0x8a   :  { %50 = vmax.xlane.f32.xlu0 %v49_v8 }
  0xfd   :  { %v51_v9 = vpop.xlane.xlu0 %50 }
  0xfe   :  { %v52_v10 = vsub.f32 %v46_v7, %v51_v9 }
 0x100   :  { %v53_v11 = vmul.f32 1.442695, %v52_v10 }
 0x102   :  { %83 = vpow2.f32 %v53_v11 }
 0x108   :  { %v84_v12 = vpop.eup %83 }
 0x109   :  { %v55_v13 = vsel %vm48_vm1, %v84_v12, 0.0 }
 0x10a   :  { %56 = vadd.xlane.f32.xlu0 %v55_v13 }
 0x17d   :  { %v57_v14 = vpop.xlane.xlu0 %56 }
 0x17e   :  { %85 = vrcp.f32 %v57_v14 }
 0x184   :  { %v86_v15 = vpop.eup %85 }
 0x185   :  { %v59_v16 = vmul.f32 %v86_v15, %v57_v14 }
 0x187   :  { %v60_v17 = vsub.f32 2.0, %v59_v16 }
 0x189   :  { %v61_v18 = vmul.f32 %v86_v15, %v60_v17 }
 0x18b   :  { %v62_v19 = vmul.f32 %v84_v12, %v61_v18 }
 0x18d   :  { %63 = vst.msk [vmem:[#allocation2] sm:$0xff] %vm48_vm1, %v62_v19 }
 0x18e   :  { %74 = dma.vmem_to_hbm [thread:$0]  %s70_s1, 128, %s72_s25, [#allocation3]  }
 0x18f   :  { %111 = dma.done.wait [#allocation3], 128  }
 0x190   :  { %112 = vsyncadd [#allocation3], 4294967168 }
 0x191   :  { %79 = vsyncpa [#allocation3], 1 }

</bundles_post_ra>
